<compile_context>
chip_gen: v5e
topology: v5e:2x2
jax: 0.10.0
libtpu: 0.0.40
codegen_flags: <defaults>
</compile_context>

<pallas_src>
import functools

import jax
import jax.numpy as jnp
from jax.experimental import pallas as pl
from jax.experimental.pallas import tpu as pltpu


# --------------------------------------------------------------------------
# Kernel
# --------------------------------------------------------------------------
def _mlp_kernel(x_ref, w1_ref, b1_ref, w2_ref, b2_ref, w3_ref, b3_ref, o_ref):
    # x_ref: (TILE_B, 36) in compute dtype (f32 or bf16)
    # w*_ref: (in, out) in compute dtype;  b*_ref: (1, out) f32
    # o_ref: (TILE_B, 4) f32
    x = x_ref[...]

    h1 = jnp.dot(x, w1_ref[...], preferred_element_type=jnp.float32) + b1_ref[...]
    h1 = jnp.maximum(h1, 0.0)                       # ReLU (f32 on VPU)

    h2 = jnp.dot(h1.astype(w2_ref.dtype), w2_ref[...],
                 preferred_element_type=jnp.float32) + b2_ref[...]
    h2 = jnp.maximum(h2, 0.0)                       # ReLU (f32 on VPU)

    out = jnp.dot(h2.astype(w3_ref.dtype), w3_ref[...],
                  preferred_element_type=jnp.float32) + b3_ref[...]
    o_ref[...] = out.astype(o_ref.dtype)


# --------------------------------------------------------------------------
# Param prep (done once, outside the hot path)
# --------------------------------------------------------------------------
def prepare_params(params, compute_dtype=jnp.float32):
    """Transpose PyTorch-convention (out,in) weights to (in,out), lift biases
    to 2-D rows, and cast weights to the compute dtype. Call once at init."""
    cd = compute_dtype
    return {
        "w1": params["fc1_w"].T.astype(cd),                    # (36, 32)
        "b1": params["fc1_b"][None, :].astype(jnp.float32),    # (1, 32)
        "w2": params["fc2_w"].T.astype(cd),                    # (32, 64)
        "b2": params["fc2_b"][None, :].astype(jnp.float32),    # (1, 64)
        "w3": params["fc3_w"].T.astype(cd),                    # (64, 4)
        "b3": params["fc3_b"][None, :].astype(jnp.float32),    # (1, 4)
    }


def _round_up(n, m):
    return ((n + m - 1) // m) * m


# --------------------------------------------------------------------------
# Forward wrapper
# --------------------------------------------------------------------------
@functools.partial(jax.jit, static_argnames=("tile_b",))
def atm_agent_dqn_forward(x, prepared, *, tile_b=512):
    """Fused 3-layer MLP forward.

    x:        (B, 36) float32
    prepared: output of prepare_params()
    returns:  (B, 4) float32 Q-values
    """
    B = x.shape[0]
    compute_dtype = prepared["w1"].dtype

    # Pick an effective batch tile: multiple of 8, no bigger than needed.
    tb = min(tile_b, _round_up(B, 8))
    tb = max(8, (tb // 8) * 8)
    Bp = _round_up(B, tb)

    xp = x.astype(compute_dtype)
    if Bp != B:
        xp = jnp.pad(xp, ((0, Bp - B), (0, 0)))      # zero-pad tail rows

    grid = (Bp // tb,)

    # x / out stream per grid step; weights & biases stay VMEM-resident
    # (constant index_map -> same block every step, loaded once).
    full = lambda a: pl.BlockSpec(a.shape, lambda i: (0, 0))

    out_p = pl.pallas_call(
        _mlp_kernel,
        out_shape=jax.ShapeDtypeStruct((Bp, 4), jnp.float32),
        grid=grid,
        in_specs=[
            pl.BlockSpec((tb, 36), lambda i: (i, 0)),
            full(prepared["w1"]), full(prepared["b1"]),
            full(prepared["w2"]), full(prepared["b2"]),
            full(prepared["w3"]), full(prepared["b3"]),
        ],
        out_specs=pl.BlockSpec((tb, 4), lambda i: (i, 0)),
        compiler_params=pltpu.CompilerParams(
            dimension_semantics=("parallel",)),
    )(xp, prepared["w1"], prepared["b1"],
      prepared["w2"], prepared["b2"],
      prepared["w3"], prepared["b3"])

    return out_p[:B]


# --------------------------------------------------------------------------
# Init + pure-JAX reference
# --------------------------------------------------------------------------
def init_params(key):
    """Deterministic PyTorch-style (Kaiming-uniform-ish) init for the 3 Linears."""
    keys = jax.random.split(key, 6)

    def linear_init(kw, kb, out_f, in_f):
        bound = 1.0 / jnp.sqrt(in_f)
        w = jax.random.uniform(kw, (out_f, in_f), jnp.float32, -bound, bound)
        b = jax.random.uniform(kb, (out_f,), jnp.float32, -bound, bound)
        return w, b

    fc1_w, fc1_b = linear_init(keys[0], keys[1], 32, 36)
    fc2_w, fc2_b = linear_init(keys[2], keys[3], 64, 32)
    fc3_w, fc3_b = linear_init(keys[4], keys[5], 4, 64)
    return {
        "fc1_w": fc1_w, "fc1_b": fc1_b,
        "fc2_w": fc2_w, "fc2_b": fc2_b,
        "fc3_w": fc3_w, "fc3_b": fc3_b,
    }


def _reference_forward(x, params):
    """Pure-JAX reference mirroring the PyTorch forward."""
    h = jnp.maximum(x @ params["fc1_w"].T + params["fc1_b"], 0.0)
    h = jnp.maximum(h @ params["fc2_w"].T + params["fc2_b"], 0.0)
    return h @ params["fc3_w"].T + params["fc3_b"]


# --------------------------------------------------------------------------
# Demo / correctness check (small shapes, minimal compilations)
# --------------------------------------------------------------------------
if __name__ == "__main__":
    key = jax.random.PRNGKey(0)
    k_params, k_x = jax.random.split(key)

    params = init_params(k_params)
    prep_f32 = prepare_params(params, jnp.float32)

    # Small aligned batch.
    B = 8
    x = jax.random.normal(k_x, (B, 36), dtype=jnp.float32)
    ref = _reference_forward(x, params)
    out = jax.block_until_ready(atm_agent_dqn_forward(x, prep_f32))
    assert out.shape == (B, 4), out.shape
    assert jnp.allclose(out, ref, atol=1e-5, rtol=1e-5), "f32 mismatch vs reference"

    # Ragged batch (exercises tail padding + result slicing).
    x_odd = jax.random.normal(jax.random.PRNGKey(1), (5, 36), dtype=jnp.float32)
    out_odd = jax.block_until_ready(atm_agent_dqn_forward(x_odd, prep_f32))
    ref_odd = _reference_forward(x_odd, params)
    assert out_odd.shape == (5, 4), out_odd.shape
    assert jnp.allclose(out_odd, ref_odd, atol=1e-5, rtol=1e-5), "ragged-batch mismatch"

    print("KERNEL_OK")
</pallas_src>

<mosaic_0001>
module attributes {stable_mosaic.version = 11 : i64} {
  func.func @_mlp_kernel(%arg0: i32, %arg1: memref<8x36xf32, #tpu.memory_space<vmem>>, %arg2: memref<36x32xf32, #tpu.memory_space<vmem>>, %arg3: memref<1x32xf32, #tpu.memory_space<vmem>>, %arg4: memref<32x64xf32, #tpu.memory_space<vmem>>, %arg5: memref<1x64xf32, #tpu.memory_space<vmem>>, %arg6: memref<64x4xf32, #tpu.memory_space<vmem>>, %arg7: memref<1x4xf32, #tpu.memory_space<vmem>>, %arg8: memref<8x4xf32, #tpu.memory_space<vmem>>) attributes {dimension_semantics = [#tpu.dimension_semantics<parallel>], iteration_bounds = array<i64: 1>, scalar_prefetch = 0 : i64, scratch_operands = 0 : i64, tpu.core_type = #tpu.core_type<tc>, window_params = [{transform_indices = @transform_0, window_bounds = array<i64: 8, 36>}, {pipeline_mode = #tpu.pipeline_mode<synchronous>, transform_indices = @transform_1, window_bounds = array<i64: 36, 32>}, {pipeline_mode = #tpu.pipeline_mode<synchronous>, transform_indices = @transform_2, window_bounds = array<i64: 1, 32>}, {pipeline_mode = #tpu.pipeline_mode<synchronous>, transform_indices = @transform_3, window_bounds = array<i64: 32, 64>}, {pipeline_mode = #tpu.pipeline_mode<synchronous>, transform_indices = @transform_4, window_bounds = array<i64: 1, 64>}, {pipeline_mode = #tpu.pipeline_mode<synchronous>, transform_indices = @transform_5, window_bounds = array<i64: 64, 4>}, {pipeline_mode = #tpu.pipeline_mode<synchronous>, transform_indices = @transform_6, window_bounds = array<i64: 1, 4>}, {transform_indices = @transform_7, window_bounds = array<i64: 8, 4>}]} {
    %c0 = arith.constant 0 : index
    %c0_0 = arith.constant 0 : index
    %0 = vector.load %arg1[%c0, %c0_0] : memref<8x36xf32, #tpu.memory_space<vmem>>, vector<8x36xf32>
    %c0_1 = arith.constant 0 : index
    %c0_2 = arith.constant 0 : index
    %1 = vector.load %arg2[%c0_1, %c0_2] : memref<36x32xf32, #tpu.memory_space<vmem>>, vector<36x32xf32>
    %cst = arith.constant dense<0.000000e+00> : vector<8x32xf32>
    %2 = tpu.matmul %0, %1, %cst {dimension_numbers = #tpu.dot_dimension_numbers<[1], [0], [0], [1], [0, 0, 1, 1], [], []>} : vector<8x36xf32>, vector<36x32xf32>, vector<8x32xf32> -> vector<8x32xf32>
    %c0_3 = arith.constant 0 : index
    %c0_4 = arith.constant 0 : index
    %3 = vector.load %arg3[%c0_3, %c0_4] : memref<1x32xf32, #tpu.memory_space<vmem>>, vector<1x32xf32>
    %4 = vector.broadcast %3 : vector<1x32xf32> to vector<8x32xf32>
    %5 = arith.addf %2, %4 : vector<8x32xf32>
    %cst_5 = arith.constant 0.000000e+00 : f32
    %6 = vector.broadcast %cst_5 : f32 to vector<8x32xf32>
    %7 = arith.maximumf %5, %6 : vector<8x32xf32>
    %c0_6 = arith.constant 0 : index
    %c0_7 = arith.constant 0 : index
    %8 = vector.load %arg4[%c0_6, %c0_7] : memref<32x64xf32, #tpu.memory_space<vmem>>, vector<32x64xf32>
    %cst_8 = arith.constant dense<0.000000e+00> : vector<8x64xf32>
    %9 = tpu.matmul %7, %8, %cst_8 {dimension_numbers = #tpu.dot_dimension_numbers<[1], [0], [0], [1], [0, 0, 1, 1], [], []>} : vector<8x32xf32>, vector<32x64xf32>, vector<8x64xf32> -> vector<8x64xf32>
    %c0_9 = arith.constant 0 : index
    %c0_10 = arith.constant 0 : index
    %10 = vector.load %arg5[%c0_9, %c0_10] : memref<1x64xf32, #tpu.memory_space<vmem>>, vector<1x64xf32>
    %11 = vector.broadcast %10 : vector<1x64xf32> to vector<8x64xf32>
    %12 = arith.addf %9, %11 : vector<8x64xf32>
    %cst_11 = arith.constant 0.000000e+00 : f32
    %13 = vector.broadcast %cst_11 : f32 to vector<8x64xf32>
    %14 = arith.maximumf %12, %13 : vector<8x64xf32>
    %c0_12 = arith.constant 0 : index
    %c0_13 = arith.constant 0 : index
    %15 = vector.load %arg6[%c0_12, %c0_13] : memref<64x4xf32, #tpu.memory_space<vmem>>, vector<64x4xf32>
    %cst_14 = arith.constant dense<0.000000e+00> : vector<8x4xf32>
    %16 = tpu.matmul %14, %15, %cst_14 {dimension_numbers = #tpu.dot_dimension_numbers<[1], [0], [0], [1], [0, 0, 1, 1], [], []>} : vector<8x64xf32>, vector<64x4xf32>, vector<8x4xf32> -> vector<8x4xf32>
    %c0_15 = arith.constant 0 : index
    %c0_16 = arith.constant 0 : index
    %17 = vector.load %arg7[%c0_15, %c0_16] : memref<1x4xf32, #tpu.memory_space<vmem>>, vector<1x4xf32>
    %18 = vector.broadcast %17 : vector<1x4xf32> to vector<8x4xf32>
    %19 = arith.addf %16, %18 : vector<8x4xf32>
    %c0_17 = arith.constant 0 : index
    %c0_18 = arith.constant 0 : index
    %20 = vector.load %arg8[%c0_17, %c0_18] : memref<8x4xf32, #tpu.memory_space<vmem>>, vector<8x4xf32>
    tpu.vector_store %arg8[%c0_17, %c0_18], %19 {strides = array<i32>} : memref<8x4xf32, #tpu.memory_space<vmem>>, vector<8x4xf32>,
    return
  }
  func.func @transform_0(%arg0: i32) -> (i32, i32) {
    %c0_i32 = arith.constant 0 : i32
    %c0_i32_0 = arith.constant 0 : i32
    return %arg0, %c0_i32 : i32, i32
  }
  func.func @transform_1(%arg0: i32) -> (i32, i32) {
    %c0_i32 = arith.constant 0 : i32
    %c0_i32_0 = arith.constant 0 : i32
    %c0_i32_1 = arith.constant 0 : i32
    return %c0_i32, %c0_i32_0 : i32, i32
  }
  func.func @transform_2(%arg0: i32) -> (i32, i32) {
    %c0_i32 = arith.constant 0 : i32
    %c0_i32_0 = arith.constant 0 : i32
    %c0_i32_1 = arith.constant 0 : i32
    return %c0_i32, %c0_i32_0 : i32, i32
  }
  func.func @transform_3(%arg0: i32) -> (i32, i32) {
    %c0_i32 = arith.constant 0 : i32
    %c0_i32_0 = arith.constant 0 : i32
    %c0_i32_1 = arith.constant 0 : i32
    return %c0_i32, %c0_i32_0 : i32, i32
  }
  func.func @transform_4(%arg0: i32) -> (i32, i32) {
    %c0_i32 = arith.constant 0 : i32
    %c0_i32_0 = arith.constant 0 : i32
    %c0_i32_1 = arith.constant 0 : i32
    return %c0_i32, %c0_i32_0 : i32, i32
  }
  func.func @transform_5(%arg0: i32) -> (i32, i32) {
    %c0_i32 = arith.constant 0 : i32
    %c0_i32_0 = arith.constant 0 : i32
    %c0_i32_1 = arith.constant 0 : i32
    return %c0_i32, %c0_i32_0 : i32, i32
  }
  func.func @transform_6(%arg0: i32) -> (i32, i32) {
    %c0_i32 = arith.constant 0 : i32
    %c0_i32_0 = arith.constant 0 : i32
    %c0_i32_1 = arith.constant 0 : i32
    return %c0_i32, %c0_i32_0 : i32, i32
  }
  func.func @transform_7(%arg0: i32) -> (i32, i32) {
    %c0_i32 = arith.constant 0 : i32
    %c0_i32_0 = arith.constant 0 : i32
    return %arg0, %c0_i32 : i32, i32
  }
}

</mosaic_0001>

<bundles_post_ra>
// kernel: atm_agent_dqn_forward.1
= control target key start
LH: loop header
LB: loop body
LE: loop exit
PB: predicated region body
PF: predicated region fallthrough
CT: control target
= control target key end

     0   :  { %vm40_vm0 = vcmask 1043456   ;;  %vm36_vm1 = vcmask 293888   ;;  %vm73_vm2 = vcmask 261120   ;;  %vm110_vm3 = vcmask 523264   ;;  %s253_s1 = inlined_call_operand.vmem [shape: f32[36,32], index: 1, kind: input, shape index: {}]   ;;  %s254_s3 = inlined_call_operand.vmem [shape: f32[32,64], index: 3, kind: input, shape index: {}]   ;;  %s255_s2 = inlined_call_operand.vmem [shape: f32[1,32], index: 2, kind: input, shape index: {}]   ;;  %s256_s0 = inlined_call_operand.vmem [shape: f32[8,36], index: 0, kind: input, shape index: {}]   ;;  %s257_s4 = inlined_call_operand.vmem [shape: f32[1,64], index: 4, kind: input, shape index: {}]   ;;  %s258_s5 = inlined_call_operand.vmem [shape: f32[64,4], index: 5, kind: input, shape index: {}]   ;;  %s259_s6 = inlined_call_operand.vmem [shape: f32[1,4], index: 6, kind: input, shape index: {}]   ;;  %s260_s7 = inlined_call_operand.vmem [shape: f32[8,4], index: 7, kind: output, shape index: {}]  }
   0x1   :  { %v31_v0 = vld [vmem:[%s253_s1 + $0x20] sm:$0xf]  ;;  %v30_v1 = vld [vmem:[%s253_s1 + $0x18] sm:$0xff]  ;;  %v29_v2 = vld [vmem:[%s253_s1 + $0x10] sm:$0xff]  ;;  %vm134_vm4 = vcmask 31744  }
   0x2   :  { %140 = vmatpush.msk.msra.mxu0 %vm40_vm0, %v31_v0  ;;  %v68_v3 = vld [vmem:[%s254_s3 + $0x18] sm:$0xff]  ;;  %v28_v4 = vld [vmem:[%s253_s1 + $0x8] sm:$0xff]  ;;  %v27_v5 = vld [vmem:[%s253_s1] sm:$0xff] }
   0x3   :  { %89 = vmatpush.msra.mxu1 %v68_v3  ;;  %v26_v6 = vld [vmem:[%s256_s0] sm:$0xff]  ;;  %v67_v7 = vld [vmem:[%s254_s3 + $0x10] sm:$0xff]  ;;  %v66_v8 = vld [vmem:[%s254_s3 + $0x8] sm:$0xff] }
   0x4   :  { %56 = vmatpush.msra.mxu0 %v30_v1  ;;  %v65_v9 = vld [vmem:[%s254_s3] sm:$0xff]  ;;  %v105_v10 = vld [vmem:[%s258_s5 + $0x38] sm:$0xff]  ;;  %v104_v11 = vld [vmem:[%s258_s5 + $0x30] sm:$0xff] }
   0x5   :  { %90 = vmatpush.msra.mxu1 %v67_v7  ;;  %122 = vmatpush.msra.mxu2 %v105_v10  ;;  %v103_v12 = vld [vmem:[%s258_s5 + $0x28] sm:$0xff]  ;;  %v102_v13 = vld [vmem:[%s258_s5 + $0x20] sm:$0xff]  ;;  %v101_v14 = vld [vmem:[%s258_s5 + $0x18] sm:$0xff] }
   0x6   :  { %57 = vmatpush.msra.mxu0 %v29_v2  ;;  %v144_v15 = vld [vmem:[%s255_s2] ss:$0 sm:$0xff]  ;;  %v100_v19 = vld [vmem:[%s258_s5 + $0x10] sm:$0xff]  ;;  %v99_v20 = vld [vmem:[%s258_s5 + $0x8] sm:$0xff] }
   0x7   :  { %91 = vmatpush.msra.mxu1 %v66_v8  ;;  %123 = vmatpush.msra.mxu2 %v104_v11  ;;  %v98_v21 = vld [vmem:[%s258_s5] sm:$0xff] }
   0x8   :  { %58 = vmatpush.msra.mxu0 %v28_v4  ;;  %v145_v22 = vld [vmem:[%s257_s4] ss:$0 sm:$0xff] }
   0x9   :  { %92 = vmatpush.msra.mxu1 %v65_v9  ;;  %124 = vmatpush.msra.mxu2 %v103_v12  ;;  %v146_v26 = vld [vmem:[%s259_s6] ss:$0 sm:$0xff] }
   0xa   :  { %59 = vmatpush.msra.mxu0 %v27_v5 }
   0xb   :  { %141 = vmatmul.msk.f32.vlgmr.msra.gmra.mxu0 %vm36_vm1, %v26_v6  ;;  %125 = vmatpush.msra.mxu2 %v102_v13 }
   0xd   :  { %126 = vmatpush.msra.mxu2 %v101_v14 }
   0xf   :  { %127 = vmatpush.msra.mxu2 %v100_v19 }
  0x11   :  { %128 = vmatpush.msra.mxu2 %v99_v20 }
  0x13   :  { %129 = vmatpush.msra.mxu2 %v98_v21 }
  0x88   :  { %v61_v16 = vpop.f32.mrf.mxu0 }
  0x89   :  { %v62_v17 = vadd.f32 %v144_v15, %v61_v16 }
  0x8b   :  { %v64_v18 = vmax.f32 %v62_v17, 0.0 }
  0x8d   :  { %142 = vmatmul.msk.f32.vlgmr.msra.gmra.mxu1 %vm73_vm2, %v64_v18 }
 0x10a   :  { %v94_v23 = vpop.f32.mrf.mxu1 }
 0x10b   :  { %v95_v24 = vadd.f32 %v145_v22, %v94_v23 }
 0x10d   :  { %v97_v25 = vmax.f32 %v95_v24, 0.0 }
 0x10f   :  { %143 = vmatmul.msk.f32.vlgmr.msra.gmra.mxu2 %vm110_vm3, %v97_v25 }
 0x192   :  { %v131_v27 = vpop.f32.mrf.mxu2 }
 0x193   :  { %v132_v28 = vadd.f32 %v146_v26, %v131_v27 }
 0x195   :  { %135 = vst.msk [vmem:[%s260_s7] sm:$0xff] %vm134_vm4, %v132_v28 }

</bundles_post_ra>
